<compile_context>
chip_gen: v6e
topology: v6e:2x2x1
jax: 0.10.0
libtpu: 0.0.40
codegen_flags: <defaults>
</compile_context>

<pallas_src>
import jax
import jax.numpy as jnp
from jax.experimental import pallas as pl
from jax.experimental.pallas import tpu as pltpu


def _round_up(x, m):
    return ((x + m - 1) // m) * m


def _patch_embed_kernel(p_ref, w_ref, cls_ref, pos_ref, o_ref):
    """One grid step == Bb batch elements fused into one MXU matmul.

    p_ref   : (Bb, N, Kp)    bf16 im2col patches (K zero-padded to Kp)
    w_ref   : (Kp, Wp)       bf16 flattened conv1 weight (zero-padded)
    cls_ref : (1, Wp)        f32  class_emb + pos_emb[0] + type_emb (pre-folded)
    pos_ref : (N, Wp)        f32  pos_emb[1:] + type_emb (pre-folded)
    o_ref   : (Bb, N+1, Wp)  output
    """
    Bb, N, Kp = p_ref.shape
    Wp = w_ref.shape[1]

    # Strided conv (kernel == stride, no bias) == patch matmul on the MXU.
    # Batch fused into M (M = Bb*N); bf16 operands, f32 accumulation.
    patches = p_ref[...].reshape(Bb * N, Kp)
    emb = jnp.dot(patches, w_ref[...], preferred_element_type=jnp.float32)
    emb = emb.reshape(Bb, N, Wp) + pos_ref[...][None, :, :]          # f32 adds

    # Direct row stores instead of an in-kernel concatenate.
    o_ref[:, pl.ds(0, 1), :] = jnp.broadcast_to(
        cls_ref[...][None, :, :], (Bb, 1, Wp)).astype(o_ref.dtype)
    o_ref[:, pl.ds(1, N), :] = emb.astype(o_ref.dtype)


def _pick_batch_block(B, N, Kp, Wp, target_m=512, vmem_cap=24 << 20):
    """Largest divisor of B whose fused-M tile fits ~target_m rows and VMEM."""
    def est(bb):
        return (2 * bb * N * Kp * 2            # patches, double-buffered bf16
                + 2 * bb * (N + 1) * Wp * 4    # output,  double-buffered f32
                + 2 * Kp * Wp * 2              # weight buffers (bf16)
                + 2 * (N + 1) * Wp * 4)        # cls + pos (f32)
    best = 1
    for bb in range(1, B + 1):
        if B % bb:
            continue
        if bb > 1 and (bb * N > target_m or est(bb) > vmem_cap):
            continue
        best = max(best, bb)
    return best, est(best)


def img_patch_embed(x, conv_w, class_embedding, positional_embedding,
                    type_embedding, patch_size):
    """Forward pass of IMGPatchEmbed.

    x:      (B, 3, H, W)  NCHW
    conv_w: (width, 3, P, P)  PyTorch Conv2d weight layout (OIHW)
    returns (B, N+1, width) with N = (H//P)*(W//P)
    """
    B, C, H, W = x.shape
    P = patch_size
    assert H % P == 0 and W % P == 0, "H, W must be multiples of patch_size"
    Gh, Gw = H // P, W // P
    N = Gh * Gw
    width = conv_w.shape[0]
    K = C * P * P

    # Lane-align contraction and output dims (zero pad). 128 works on all
    # generations; v6e/v7x would also be happy with 256-aligned K.
    Kp = _round_up(K, 128)
    Wp = _round_up(width, 128)

    # --- glue: im2col with the bf16 cast fused into the same pass.  Patch
    # flatten order is (C, Ph, Pw), matching the OIHW weight flatten below.
    patches = x.reshape(B, C, Gh, P, Gw, P)
    patches = patches.transpose(0, 2, 4, 1, 3, 5).reshape(B, N, K)
    patches = patches.astype(jnp.bfloat16)
    if Kp != K:
        patches = jnp.pad(patches, ((0, 0), (0, 0), (0, Kp - K)))

    # --- glue: flatten + zero-pad conv weight to (Kp, Wp), bf16 operand.
    w_flat = conv_w.reshape(width, K).T.astype(jnp.bfloat16)
    w_flat = jnp.pad(w_flat, ((0, Kp - K), (0, Wp - width)))

    # --- glue: pre-fold the small embeddings (stay f32; adds stay f32 in-kernel).
    cls_row = (class_embedding + positional_embedding[0] + type_embedding)
    pos_rest = (positional_embedding[1:] + type_embedding[None, :])
    cls_row = jnp.pad(cls_row.astype(jnp.float32).reshape(1, width),
                      ((0, 0), (0, Wp - width)))
    pos_rest = jnp.pad(pos_rest.astype(jnp.float32),
                       ((0, 0), (0, Wp - width)))

    Bb, vmem_est = _pick_batch_block(B, N, Kp, Wp)
    grid = (B // Bb,)
    # NOTE: on v7x (2 TensorCores) prefer B/Bb >= 2 so both TCs get work; with
    # realistic batch sizes _pick_batch_block leaves multiple grid steps.

    out = pl.pallas_call(
        _patch_embed_kernel,
        out_shape=jax.ShapeDtypeStruct((B, N + 1, Wp), x.dtype),
        grid_spec=pltpu.PrefetchScalarGridSpec(
            num_scalar_prefetch=0,
            grid=grid,
            in_specs=[
                pl.BlockSpec((Bb, N, Kp), lambda i: (i, 0, 0)),
                pl.BlockSpec((Kp, Wp), lambda i: (0, 0)),
                pl.BlockSpec((1, Wp), lambda i: (0, 0)),
                pl.BlockSpec((N, Wp), lambda i: (0, 0)),
            ],
            out_specs=pl.BlockSpec((Bb, N + 1, Wp), lambda i: (i, 0, 0)),
        ),
        compiler_params=pltpu.CompilerParams(
            dimension_semantics=("parallel",),
            vmem_limit_bytes=min(64 << 20,
                                 max(16 << 20, int(1.5 * vmem_est) + (2 << 20))),
        ),
    )(patches, w_flat, cls_row, pos_rest)

    if Wp != width:
        out = out[..., :width]   # no-op for real widths (multiples of 128)
    return out


def _reference(x, conv_w, cls, pos, typ, patch_size):
    """Pure-JAX (f32) reference mirroring the PyTorch forward."""
    y = jax.lax.conv_general_dilated(
        x, conv_w, window_strides=(patch_size, patch_size), padding="VALID",
        dimension_numbers=("NCHW", "OIHW", "NCHW"))        # (B, width, Gh, Gw)
    B, Wd = y.shape[0], y.shape[1]
    y = y.reshape(B, Wd, -1).transpose(0, 2, 1)             # (B, N, width)
    cls_tok = jnp.broadcast_to(cls.reshape(1, 1, Wd), (B, 1, Wd))
    y = jnp.concatenate([cls_tok, y], axis=1)
    y = y + pos[None, :, :]
    y = y + typ
    return y


if __name__ == "__main__":
    # Small shapes consistent with the module:
    #   input_resolution=16, patch_size=8, width=32  ->  N = 4, seq = 5
    B, C = 2, 3
    input_resolution, patch_size, width = 16, 8, 32

    key = jax.random.PRNGKey(0)
    k_x, k_w, k_cls, k_pos, k_typ = jax.random.split(key, 5)

    x = jax.random.normal(k_x, (B, C, input_resolution, input_resolution),
                          dtype=jnp.float32)

    scale = width ** (-0.5)
    conv_w = jax.random.normal(
        k_w, (width, C, patch_size, patch_size), dtype=jnp.float32) * 0.02
    class_embedding = scale * jax.random.normal(k_cls, (width,), jnp.float32)
    positional_embedding = scale * jax.random.normal(
        k_pos, ((input_resolution // patch_size) ** 2 + 1, width), jnp.float32)
    type_embedding = scale * jax.random.normal(k_typ, (width,), jnp.float32)

    out = img_patch_embed(x, conv_w, class_embedding, positional_embedding,
                          type_embedding, patch_size)
    out = jax.block_until_ready(out)

    ref = _reference(x, conv_w, class_embedding, positional_embedding,
                     type_embedding, patch_size)
    N1 = (input_resolution // patch_size) ** 2 + 1
    assert out.shape == ref.shape == (B, N1, width)
    # bf16 MXU operands with f32 accumulation vs. pure-f32 reference.
    assert jnp.allclose(out, ref, atol=3e-2, rtol=3e-2), \
        float(jnp.max(jnp.abs(out - ref)))

    print("KERNEL_OK")
</pallas_src>

<mosaic_0001>
module attributes {stable_mosaic.version = 11 : i64} {
  func.func @_patch_embed_kernel(%arg0: i32, %arg1: memref<2x4x256xbf16, #tpu.memory_space<vmem>>, %arg2: memref<256x128xbf16, #tpu.memory_space<vmem>>, %arg3: memref<1x128xf32, #tpu.memory_space<vmem>>, %arg4: memref<4x128xf32, #tpu.memory_space<vmem>>, %arg5: memref<2x5x128xf32, #tpu.memory_space<vmem>>) attributes {dimension_semantics = [#tpu.dimension_semantics<parallel>], iteration_bounds = array<i64: 1>, scalar_prefetch = 0 : i64, scratch_operands = 0 : i64, tpu.core_type = #tpu.core_type<tc>, window_params = [{transform_indices = @transform_0, window_bounds = array<i64: 2, 4, 256>}, {pipeline_mode = #tpu.pipeline_mode<synchronous>, transform_indices = @transform_1, window_bounds = array<i64: 256, 128>}, {pipeline_mode = #tpu.pipeline_mode<synchronous>, transform_indices = @transform_2, window_bounds = array<i64: 1, 128>}, {pipeline_mode = #tpu.pipeline_mode<synchronous>, transform_indices = @transform_3, window_bounds = array<i64: 4, 128>}, {transform_indices = @transform_4, window_bounds = array<i64: 2, 5, 128>}]} {
    %c0 = arith.constant 0 : index
    %c0_0 = arith.constant 0 : index
    %c0_1 = arith.constant 0 : index
    %0 = vector.load %arg1[%c0, %c0_0, %c0_1] : memref<2x4x256xbf16, #tpu.memory_space<vmem>>, vector<2x4x256xbf16>
    %1 = vector.shape_cast %0 : vector<2x4x256xbf16> to vector<8x256xbf16>
    %c0_2 = arith.constant 0 : index
    %c0_3 = arith.constant 0 : index
    %2 = vector.load %arg2[%c0_2, %c0_3] : memref<256x128xbf16, #tpu.memory_space<vmem>>, vector<256x128xbf16>
    %cst = arith.constant dense<0.000000e+00> : vector<8x128xf32>
    %3 = tpu.matmul %1, %2, %cst {dimension_numbers = #tpu.dot_dimension_numbers<[1], [0], [0], [1], [0, 0, 1, 1], [], []>} : vector<8x256xbf16>, vector<256x128xbf16>, vector<8x128xf32> -> vector<8x128xf32>
    %4 = vector.shape_cast %3 : vector<8x128xf32> to vector<2x4x128xf32>
    %c0_4 = arith.constant 0 : index
    %c0_5 = arith.constant 0 : index
    %5 = vector.load %arg4[%c0_4, %c0_5] : memref<4x128xf32, #tpu.memory_space<vmem>>, vector<4x128xf32>
    %6 = vector.shape_cast %5 : vector<4x128xf32> to vector<1x4x128xf32>
    %7 = vector.broadcast %6 : vector<1x4x128xf32> to vector<2x4x128xf32>
    %8 = arith.addf %4, %7 : vector<2x4x128xf32>
    %c0_6 = arith.constant 0 : index
    %c0_7 = arith.constant 0 : index
    %9 = vector.load %arg3[%c0_6, %c0_7] : memref<1x128xf32, #tpu.memory_space<vmem>>, vector<1x128xf32>
    %10 = vector.shape_cast %9 : vector<1x128xf32> to vector<1x1x128xf32>
    %11 = vector.shape_cast %10 : vector<1x1x128xf32> to vector<1x1x128xf32>
    %12 = vector.broadcast %11 : vector<1x1x128xf32> to vector<2x1x128xf32>
    %c0_8 = arith.constant 0 : index
    %c0_9 = arith.constant 0 : index
    %c0_10 = arith.constant 0 : index
    %13 = vector.load %arg5[%c0_8, %c0_9, %c0_10] : memref<2x5x128xf32, #tpu.memory_space<vmem>>, vector<2x1x128xf32>
    tpu.vector_store %arg5[%c0_8, %c0_9, %c0_10], %12 {strides = array<i32>} : memref<2x5x128xf32, #tpu.memory_space<vmem>>, vector<2x1x128xf32>,
    %c0_11 = arith.constant 0 : index
    %c1 = arith.constant 1 : index
    %c0_12 = arith.constant 0 : index
    %14 = vector.load %arg5[%c0_11, %c1, %c0_12] : memref<2x5x128xf32, #tpu.memory_space<vmem>>, vector<2x4x128xf32>
    tpu.vector_store %arg5[%c0_11, %c1, %c0_12], %8 {strides = array<i32>} : memref<2x5x128xf32, #tpu.memory_space<vmem>>, vector<2x4x128xf32>,
    return
  }
  func.func @transform_0(%arg0: i32) -> (i32, i32, i32) {
    %c0_i32 = arith.constant 0 : i32
    %c0_i32_0 = arith.constant 0 : i32
    %c0_i32_1 = arith.constant 0 : i32
    return %arg0, %c0_i32, %c0_i32_0 : i32, i32, i32
  }
  func.func @transform_1(%arg0: i32) -> (i32, i32) {
    %c0_i32 = arith.constant 0 : i32
    %c0_i32_0 = arith.constant 0 : i32
    %c0_i32_1 = arith.constant 0 : i32
    return %c0_i32, %c0_i32_0 : i32, i32
  }
  func.func @transform_2(%arg0: i32) -> (i32, i32) {
    %c0_i32 = arith.constant 0 : i32
    %c0_i32_0 = arith.constant 0 : i32
    %c0_i32_1 = arith.constant 0 : i32
    return %c0_i32, %c0_i32_0 : i32, i32
  }
  func.func @transform_3(%arg0: i32) -> (i32, i32) {
    %c0_i32 = arith.constant 0 : i32
    %c0_i32_0 = arith.constant 0 : i32
    %c0_i32_1 = arith.constant 0 : i32
    return %c0_i32, %c0_i32_0 : i32, i32
  }
  func.func @transform_4(%arg0: i32) -> (i32, i32, i32) {
    %c0_i32 = arith.constant 0 : i32
    %c0_i32_0 = arith.constant 0 : i32
    %c0_i32_1 = arith.constant 0 : i32
    return %arg0, %c0_i32, %c0_i32_0 : i32, i32, i32
  }
}

</mosaic_0001>

<bundles_post_ra>
// kernel: tpu_custom_call.1
= control target key start
LH: loop header
LB: loop body
LE: loop exit
PB: predicated region body
PF: predicated region fallthrough
CT: control target
= control target key end

     0   :  { %9 = vsyncpa [#allocation3], 0  ;;  %s404_s0 = inlined_call_operand.hbm [shape: bf16[2,4,256], index: 0, kind: input, shape index: {}]   ;;  %s405_s1 = inlined_call_operand.hbm [shape: bf16[256,128], index: 1, kind: input, shape index: {}]   ;;  %s406_s2 = inlined_call_operand.vmem [shape: f32[1,128], index: 2, kind: input, shape index: {}]   ;;  %s407_s3 = inlined_call_operand.vmem [shape: f32[4,128], index: 3, kind: input, shape index: {}]   ;;  %s408_s4 = inlined_call_operand.vmem [shape: f32[2,5,128], index: 4, kind: output, shape index: {}]  }
   0x1   :  { %10 = vsyncpa [#allocation5], 0  ;;  %s351_s15 = smov [#allocation2]  }
   0x2   :  { %s16_s16 = sshll.u32 %s351_s15, 4  ;;  %s17_s16 = int_to_ptr.vmem [resolvable:$true] %s16_s16 }
   0x3   :  { %s315_s17 = scalar_lea.vmem %s17_s16, 128  ;;  %p320_p1 = scmp.lt.s32.totalorder %s17_s16, %s17_s16 }
   0x4   :  { %p316_p0 = scmp.ne.s32.totalorder %s17_s16, %s315_s17  ;;  %p321_p2 = scmp.lt.s32.totalorder %s315_s17, %s315_s17 }
   0x6   :  { %p322_p3 = por %p321_p2, %p320_p1 }
   0x8   :  { %p323_p4 = pnand %p322_p3, %p316_p0 }
   0xa   :  { %326 = shalt.err (!%p323_p4)
}
   0xb   :  { %s352_s18 = smov 64   ;;  %s353_s19 = smov 4  }
   0xc   :  { %22 = dma.hbm_to_vmem [thread:$0]  %s404_s0, 128, %s17_s16, [#allocation3], %s352_s18, %s352_s18, %s353_s19  }
   0xd   :  { %s354_s22 = smov [#allocation4]  }
   0xe   :  { %s28_s23 = sshll.u32 %s354_s22, 4  ;;  %s29_s23 = int_to_ptr.vmem [resolvable:$true] %s28_s23 }
   0xf   :  { %s335_s24 = scalar_lea.vmem %s29_s23, 2048  ;;  %p340_p6 = scmp.lt.s32.totalorder %s29_s23, %s29_s23 }
  0x10   :  { %p336_p5 = scmp.ne.s32.totalorder %s29_s23, %s335_s24  ;;  %p341_p7 = scmp.lt.s32.totalorder %s335_s24, %s335_s24 }
  0x12   :  { %p342_p8 = por %p341_p7, %p340_p6 }
  0x14   :  { %p343_p9 = pnand %p342_p8, %p336_p5 }
  0x16   :  { %346 = shalt.err (!%p343_p9)
}
  0x17   :  { %34 = dma.hbm_to_vmem [thread:$0]  %s405_s1, 2048, %s29_s23, [#allocation5], %s352_s18, %s352_s18, %s353_s19  }
  0x18   :  { %347 = dma.done.wait [#allocation3], 128  }
  0x19   :  { %348 = vsyncadd [#allocation3], 4294967168 }
  0x1a   :  { %349 = dma.done.wait [#allocation5], 2048  }
  0x1b   :  { %350 = vsyncadd [#allocation5], 4294965248  ;;  %v235_v0 = vld [vmem:[%s406_s2] sm:$0x1]  ;;  %v291_v3 = vld [vmem:[#allocation4 + $0x70] sm:$0xff]  }
  0x1c   :  { %236 = vst [vmem:[%s408_s4] sm:$0x1] %v235_v0  ;;  %237 = vst [vmem:[%s408_s4 + $0x8] sm:$0x1] %v235_v0  ;;  %v289_v1 = vld [vmem:[#allocation4 + $0x78] sm:$0xff]   ;;  %v292_v4 = vld [vmem:[#allocation4 + $0x30] sm:$0xff]  }
  0x1d   :  { %v290_v2 = vld [vmem:[#allocation4 + $0x38] sm:$0xff]   ;;  %262 = vmatprep.subr.bf16.mxu0 %v289_v1  ;;  %v293_v5 = vld [vmem:[#allocation4 + $0x68] sm:$0xff]   ;;  %v295_v7 = vld [vmem:[#allocation4 + $0x60] sm:$0xff]  }
  0x1e   :  { %263 = vmatpush3.bf16.msra.mxu0 %v290_v2  ;;  %v294_v6 = vld [vmem:[#allocation4 + $0x28] sm:$0xff]   ;;  %v296_v8 = vld [vmem:[#allocation4 + $0x20] sm:$0xff]   ;;  %v297_v9 = vld [vmem:[#allocation4 + $0x58] sm:$0xff]  }
  0x1f   :  { %264 = vmatprep.subr.bf16.mxu0 %v291_v3  ;;  %v298_v10 = vld [vmem:[#allocation4 + $0x18] sm:$0xff]   ;;  %v299_v11 = vld [vmem:[#allocation4 + $0x50] sm:$0xff]   ;;  %v301_v14 = vld [vmem:[#allocation4 + $0x48] sm:$0xff]  }
  0x20   :  { %v306_v12 = vld.sshfl [vmem:[#allocation2] sm:$0xff pattern:$0x76325410]  ;;  %v300_v13 = vld [vmem:[#allocation4 + $0x10] sm:$0xff]   ;;  %v302_v16 = vld [vmem:[#allocation4 + $0x8] sm:$0xff]  }
  0x21   :  { %v90_v15 = vcombine.high %v306_v12, %v306_v12  ;;  %v303_v17 = vld [vmem:[#allocation4 + $0x40] sm:$0xff]   ;;  %v232_v21 = vld [vmem:[%s407_s3] sm:$0xf] }
  0x22   :  { %265 = vmatpush3.bf16.msra.mxu0 %v292_v4  ;;  %v304_v18 = vld [vmem:[#allocation4] sm:$0xff]  }
  0x23   :  { %266 = vmatprep.subr.bf16.mxu0 %v293_v5  ;;  %221 = vmatprep.mubr.bf16.mxu0 %v90_v15 }
  0x26   :  { %267 = vmatpush3.bf16.msra.mxu0 %v294_v6 }
  0x27   :  { %268 = vmatprep.subr.bf16.mxu0 %v295_v7 }
  0x2a   :  { %269 = vmatpush3.bf16.msra.mxu0 %v296_v8 }
  0x2b   :  { %270 = vmatprep.subr.bf16.mxu0 %v297_v9 }
  0x2e   :  { %271 = vmatpush3.bf16.msra.mxu0 %v298_v10 }
  0x2f   :  { %272 = vmatprep.subr.bf16.mxu0 %v299_v11 }
  0x32   :  { %273 = vmatpush3.bf16.msra.mxu0 %v300_v13 }
  0x33   :  { %274 = vmatprep.subr.bf16.mxu0 %v301_v14 }
  0x36   :  { %275 = vmatpush3.bf16.msra.mxu0 %v302_v16 }
  0x37   :  { %276 = vmatprep.subr.bf16.mxu0 %v303_v17 }
  0x3a   :  { %277 = vmatpush3.bf16.msra.mxu0 %v304_v18 }
  0x3d   :  { %222 = vmatmul.mubr.bf16.vlgmr.msra.gmra.mxu0 %v306_v12 }
  0xfd   :  { %v278_v19 = vpop.f32.mrf.mxu0 }
  0xff   :  { %v279_v20 = vpop.f32.mrf.mxu0 }
 0x100   :  { %v280_v22 = vadd.f32 %v279_v20, %v278_v19 }
 0x101   :  { %v281_v23 = vpop.f32.mrf.mxu0 }
 0x102   :  { %v230_v24 = vcombine.high %v280_v22, %v280_v22  ;;  %v233_v25 = vadd.f32 %v280_v22, %v232_v21 }
 0x103   :  { %v282_v26 = vpop.f32.mrf.mxu0 }
 0x104   :  { %v234_v27 = vadd.f32 %v232_v21, %v230_v24  ;;  %238 = vst [vmem:[%s408_s4 + $0x1] sm:$0xf] %v233_v25 }
 0x106   :  { %239 = vst [vmem:[%s408_s4 + $0x9] sm:$0xf] %v234_v27 }
 0x107   :  { %244 = vsyncpa [#allocation3], 1 }
 0x108   :  { %245 = vsyncpa [#allocation5], 1 }

</bundles_post_ra>
